<compile_context>
chip_gen: v7x
topology: tpu7x:2x2x1
jax: 0.10.0
libtpu: 0.0.40
codegen_flags: <defaults>
</compile_context>

<pallas_src>
import jax
import jax.numpy as jnp
from jax.experimental import pallas as pl
from jax.experimental.pallas import tpu as pltpu


_VMEM_BUDGET_BYTES = 56 * 1024 * 1024   # leave headroom under v7x's 64 MiB/TC


def _round_up(x, m):
    return (x + m - 1) // m * m


def _vit_output_kernel(h_ref, w_ref, b_ref, res_ref, o_ref):
    # h_ref:   (TM, I)  intermediate activations (row tile), caller dtype
    # w_ref:   (I, H)   dense weight, pre-transposed + bf16, VMEM-resident
    # b_ref:   (1, H)   dense bias, f32, VMEM-resident
    # res_ref: (TM, H)  residual input_tensor (row tile)
    # o_ref:   (TM, H)  output (row tile), aliased with the residual in HBM
    h = h_ref[...].astype(jnp.bfloat16)               # bf16 MXU inputs
    acc = jnp.dot(h, w_ref[...], preferred_element_type=jnp.float32)
    acc = acc + b_ref[...].astype(jnp.float32)        # bias (broadcast over rows)
    acc = acc + res_ref[...].astype(jnp.float32)      # residual add (f32 epilogue)
    # Dropout is identity at inference; nothing to do.
    o_ref[...] = acc.astype(o_ref.dtype)


def prepare_vit_output_params(weight, bias):
    """One-time ("model init") parameter prep.

    weight: PyTorch nn.Linear layout (H, I) -> transposed to (I, H) and cast
    to bf16 so the kernel contracts canonically on the MXU without per-tile
    transposes and never touches an f32 weight.  bias -> (1, H) f32.
    """
    w_t_bf16 = jnp.asarray(weight).T.astype(jnp.bfloat16)
    b_row = jnp.asarray(bias).reshape(1, -1).astype(jnp.float32)
    return w_t_bf16, b_row


def _vmem_estimate(tm, inter, hid, act_bytes, out_bytes):
    h_tile = tm * inter * act_bytes * 2     # activations, double-buffered
    res_tile = tm * hid * out_bytes * 2     # residual, double-buffered
    out_tile = tm * hid * out_bytes * 2     # output, double-buffered
    weight = inter * hid * 2 * 2            # bf16; count 2 buffers conservatively
    bias = 8 * _round_up(hid, 128) * 4      # padded SMEM/VMEM row
    acc = tm * hid * 4                      # in-kernel f32 accumulator temp
    return h_tile + res_tile + out_tile + weight + bias + acc


def _choose_tm(M, inter, hid, tm_max, act_bytes, out_bytes):
    # At least ~4 row tiles (megacore sharding + pipeline overlap even at
    # small batch), rows a multiple of 8 (sublane), capped at tm_max; then
    # shrink until the double-buffered working set fits the VMEM budget.
    tm = min(tm_max, max(8, _round_up(pl.cdiv(M, 4), 8)))
    while tm > 8 and _vmem_estimate(tm, inter, hid, act_bytes, out_bytes) > _VMEM_BUDGET_BYTES:
        tm = max(8, _round_up(tm // 2, 8))
    return tm


def vit_output(hidden_states, input_tensor, weight_t_bf16, bias_row, *, tm=512):
    """hidden_states: (B, S, I), input_tensor: (B, S, H),
    weight_t_bf16: (I, H) bf16 (from prepare_vit_output_params),
    bias_row: (1, H) f32.  Returns (B, S, H) in input_tensor.dtype."""
    B, S, I = hidden_states.shape
    H = input_tensor.shape[-1]
    M = B * S

    h2d = hidden_states.reshape(M, I)
    r2d = input_tensor.reshape(M, H)

    act_bytes = jnp.dtype(hidden_states.dtype).itemsize
    out_bytes = jnp.dtype(input_tensor.dtype).itemsize

    TM = _choose_tm(M, I, H, tm, act_bytes, out_bytes)
    grid = (pl.cdiv(M, TM),)

    vmem_est = _vmem_estimate(TM, I, H, act_bytes, out_bytes)
    vmem_limit = int(min(_VMEM_BUDGET_BYTES,
                         max(vmem_est + (vmem_est >> 2) + (4 << 20), 32 << 20)))

    cost = pl.CostEstimate(
        flops=2 * M * I * H,
        transcendentals=0,
        bytes_accessed=(M * I * act_bytes      # activations read
                        + I * H * 2            # bf16 weight read
                        + H * 4                # bias read
                        + M * H * out_bytes    # residual read
                        + M * H * out_bytes),  # output write
    )

    out2d = pl.pallas_call(
        _vit_output_kernel,
        out_shape=jax.ShapeDtypeStruct((M, H), input_tensor.dtype),
        grid=grid,
        in_specs=[
            pl.BlockSpec((TM, I), lambda i: (i, 0)),   # activations: tiled over M
            pl.BlockSpec((I, H), lambda i: (0, 0)),    # weight: resident in VMEM
            pl.BlockSpec((1, H), lambda i: (0, 0)),    # bias: resident in VMEM
            pl.BlockSpec((TM, H), lambda i: (i, 0)),   # residual: tiled over M
        ],
        out_specs=pl.BlockSpec((TM, H), lambda i: (i, 0)),
        input_output_aliases={3: 0},                   # reuse residual HBM buffer
        compiler_params=pltpu.CompilerParams(
            dimension_semantics=("parallel",),          # shard row tiles across TCs
            vmem_limit_bytes=vmem_limit,
        ),
        cost_estimate=cost,
    )(h2d, weight_t_bf16, bias_row, r2d)

    return out2d.reshape(B, S, H)


if __name__ == "__main__":
    # Small synthetic config: batch=2, seq=8, intermediate_size=64, hidden_size=32
    B, S, INTER, HID = 2, 8, 64, 32

    key = jax.random.PRNGKey(0)
    k1, k2, k3, k4 = jax.random.split(key, 4)

    hidden_states = jax.random.normal(k1, (B, S, INTER), dtype=jnp.float32)
    input_tensor = jax.random.normal(k2, (B, S, HID), dtype=jnp.float32)
    # nn.Linear(intermediate_size, hidden_size): weight (H, I), bias (H,)
    weight = jax.random.normal(k3, (HID, INTER), dtype=jnp.float32) * 0.02
    bias = jax.random.normal(k4, (HID,), dtype=jnp.float32) * 0.02

    # One-time weight prep (transpose + bf16 cast), done at "model init".
    w_t_bf16, b_row = prepare_vit_output_params(weight, bias)

    out = jax.jit(vit_output)(hidden_states, input_tensor, w_t_bf16, b_row)
    out = jax.block_until_ready(out)

    # Reference with matching bf16-input / f32-accumulate matmul semantics.
    h2 = hidden_states.reshape(-1, INTER).astype(jnp.bfloat16)
    ref = jnp.dot(h2, w_t_bf16, preferred_element_type=jnp.float32)
    ref = (ref + bias + input_tensor.reshape(-1, HID)).reshape(B, S, HID)
    assert jnp.allclose(out, ref, atol=2e-3, rtol=2e-3), "mismatch vs bf16 reference"

    # Loose sanity check vs. the exact f32 PyTorch semantics.
    ref_f32 = hidden_states @ weight.T + bias + input_tensor
    assert jnp.allclose(out, ref_f32, atol=3e-2, rtol=3e-2), "mismatch vs f32 reference"

    print("KERNEL_OK")
</pallas_src>

<mosaic_0001>
module attributes {stable_mosaic.version = 11 : i64} {
  func.func @_vit_output_kernel(%arg0: i32, %arg1: memref<8x64xf32, #tpu.memory_space<vmem>>, %arg2: memref<64x32xbf16, #tpu.memory_space<vmem>>, %arg3: memref<1x32xf32, #tpu.memory_space<vmem>>, %arg4: memref<8x32xf32, #tpu.memory_space<vmem>>, %arg5: memref<8x32xf32, #tpu.memory_space<vmem>>) attributes {dimension_semantics = [#tpu.dimension_semantics<parallel>], iteration_bounds = array<i64: 2>, scalar_prefetch = 0 : i64, scratch_operands = 0 : i64, tpu.core_type = #tpu.core_type<tc>, window_params = [{transform_indices = @transform_0, window_bounds = array<i64: 8, 64>}, {pipeline_mode = #tpu.pipeline_mode<synchronous>, transform_indices = @transform_1, window_bounds = array<i64: 64, 32>}, {pipeline_mode = #tpu.pipeline_mode<synchronous>, transform_indices = @transform_2, window_bounds = array<i64: 1, 32>}, {transform_indices = @transform_3, window_bounds = array<i64: 8, 32>}, {transform_indices = @transform_4, window_bounds = array<i64: 8, 32>}]} {
    %c0 = arith.constant 0 : index
    %c0_0 = arith.constant 0 : index
    %0 = vector.load %arg1[%c0, %c0_0] : memref<8x64xf32, #tpu.memory_space<vmem>>, vector<8x64xf32>
    %1 = arith.truncf %0 : vector<8x64xf32> to vector<8x64xbf16>
    %c0_1 = arith.constant 0 : index
    %c0_2 = arith.constant 0 : index
    %2 = vector.load %arg2[%c0_1, %c0_2] : memref<64x32xbf16, #tpu.memory_space<vmem>>, vector<64x32xbf16>
    %cst = arith.constant dense<0.000000e+00> : vector<8x32xf32>
    %3 = tpu.matmul %1, %2, %cst {dimension_numbers = #tpu.dot_dimension_numbers<[1], [0], [0], [1], [0, 0, 1, 1], [], []>} : vector<8x64xbf16>, vector<64x32xbf16>, vector<8x32xf32> -> vector<8x32xf32>
    %c0_3 = arith.constant 0 : index
    %c0_4 = arith.constant 0 : index
    %4 = vector.load %arg3[%c0_3, %c0_4] : memref<1x32xf32, #tpu.memory_space<vmem>>, vector<1x32xf32>
    %5 = vector.broadcast %4 : vector<1x32xf32> to vector<8x32xf32>
    %6 = arith.addf %3, %5 : vector<8x32xf32>
    %c0_5 = arith.constant 0 : index
    %c0_6 = arith.constant 0 : index
    %7 = vector.load %arg4[%c0_5, %c0_6] : memref<8x32xf32, #tpu.memory_space<vmem>>, vector<8x32xf32>
    %8 = arith.addf %6, %7 : vector<8x32xf32>
    %c0_7 = arith.constant 0 : index
    %c0_8 = arith.constant 0 : index
    %9 = vector.load %arg5[%c0_7, %c0_8] : memref<8x32xf32, #tpu.memory_space<vmem>>, vector<8x32xf32>
    tpu.vector_store %arg5[%c0_7, %c0_8], %8 {strides = array<i32>} : memref<8x32xf32, #tpu.memory_space<vmem>>, vector<8x32xf32>,
    return
  }
  func.func @transform_0(%arg0: i32) -> (i32, i32) {
    %c0_i32 = arith.constant 0 : i32
    %c0_i32_0 = arith.constant 0 : i32
    return %arg0, %c0_i32 : i32, i32
  }
  func.func @transform_1(%arg0: i32) -> (i32, i32) {
    %c0_i32 = arith.constant 0 : i32
    %c0_i32_0 = arith.constant 0 : i32
    %c0_i32_1 = arith.constant 0 : i32
    return %c0_i32, %c0_i32_0 : i32, i32
  }
  func.func @transform_2(%arg0: i32) -> (i32, i32) {
    %c0_i32 = arith.constant 0 : i32
    %c0_i32_0 = arith.constant 0 : i32
    %c0_i32_1 = arith.constant 0 : i32
    return %c0_i32, %c0_i32_0 : i32, i32
  }
  func.func @transform_3(%arg0: i32) -> (i32, i32) {
    %c0_i32 = arith.constant 0 : i32
    %c0_i32_0 = arith.constant 0 : i32
    return %arg0, %c0_i32 : i32, i32
  }
  func.func @transform_4(%arg0: i32) -> (i32, i32) {
    %c0_i32 = arith.constant 0 : i32
    %c0_i32_0 = arith.constant 0 : i32
    return %arg0, %c0_i32 : i32, i32
  }
}

</mosaic_0001>

<bundles_post_ra>
// kernel: vit_output.1
= control target key start
LH: loop header
LB: loop body
LE: loop exit
PB: predicated region body
PF: predicated region fallthrough
CT: control target
= control target key end

     0   :  { %s447_s15 = smov 0   ;;  %s482_s0 = inlined_call_operand.vmem [shape: f32[16,64], index: 0, kind: input, shape index: {}]   ;;  %s483_s1 = inlined_call_operand.vmem [shape: bf16[64,32], index: 1, kind: input, shape index: {}]   ;;  %s484_s2 = inlined_call_operand.vmem [shape: f32[1,32], index: 2, kind: input, shape index: {}]   ;;  %s485_s3 = inlined_call_operand.vmem [shape: f32[16,32], index: 3, kind: input, shape index: {}, may-alias: {3,4}]   ;;  %s486_s4 = inlined_call_operand.vmem [shape: f32[16,32], index: 4, kind: output, shape index: {}, may-alias: {3,4}]  }
   0x1 LB: > { %s365_s16 = sadd.s32 4294967295, %s418_s15   ;;  %p369_p0 = scmp.ge.s32.totalorder %s418_s15, 1  ;;  %s418_s15 = sphi %s447_s15, %s14_s15  }
   0x2   : > { %p170_p1 = scmp.lt.s32.totalorder %s418_s15, 3 }
   0x4   : > { %p171_p2 = pnand %p369_p0, %p170_p1 }
   0x5   : > { %v408_v0 = vld [vmem:[%s483_s1] sm:$0xff] (!%p171_p2)   ;;  %v420_v1 = vmov (!%p171_p2), 0.0   ;;  %v409_v2 = vld [vmem:[%s483_s1 + $0x8] sm:$0xff] (!%p171_p2)   ;;  %vm421_vm0 = vmmov (!%p171_p2), 0   ;;  %p198_p3 = scmp.lt.s32.totalorder (!%p171_p2), %s365_s16, 1  ;;  %v410_v3 = vld [vmem:[%s483_s1 + $0x10] sm:$0xff] (!%p171_p2)  }
   0x6   : > { %174 = sbr.rel (%p171_p2) target bundleno = 239 (0xef), region = 36  ;;  %386 = vmatprep.subr.bf16.mxu0 (!%p171_p2), %v420_v1  ;;  %394 = vmatprep.mubr.msk.bf16.mxu0 (!%p171_p2), %vm421_vm0, %v420_v1  ;;  %v411_v4 = vld [vmem:[%s483_s1 + $0x18] sm:$0xff] (!%p171_p2)   ;;  %vm252_vm1 = vcmask (!%p171_p2), 523264   ;;  %v373_v7 = vld [vmem:[%s484_s2] ss:$0 sm:$0xff] (!%p171_p2)  ;;  %vm298_vm2 = vcmask (!%p171_p2), 261120  }
   0x7   : > { %387 = vmatpush3.bf16.msra.mxu0 (!%p171_p2), %v408_v0 }
   0x8   : > { %388 = vmatprep.subr.bf16.mxu0 (!%p171_p2), %v420_v1 }
   0xb   : > { %389 = vmatpush3.bf16.msra.mxu0 (!%p171_p2), %v409_v2 }
   0xc   : > { %390 = vmatprep.subr.bf16.mxu0 (!%p171_p2), %v420_v1 }
   0xd   : > { %s488_s16 = smov (!%p198_p3, %s365_s16), 1 }
   0xe   : > { %s370_s23 = sshll.u32 %s488_s16, 3 }
   0xf   : > { %s201_s26 = scalar_lea.vmem %s482_s0, %s370_s23  ;;  %391 = vmatpush3.bf16.msra.mxu0 %v410_v3  ;;  %s205_s5 = scalar_lea.vmem %s485_s3, %s370_s23 }
  0x10   : > { %v211_v5 = vld [vmem:[%s201_s26] sm:$0xff]  ;;  %392 = vmatprep.subr.bf16.mxu0 %v420_v1  ;;  %s209_s10 = scalar_lea.vmem %s486_s4, %s370_s23 }
  0x11   : > { %v212_v6 = vpack.c.bf16 %v211_v5, %v211_v5  ;;  %v296_v9 = vld [vmem:[%s205_s5] sm:$0xff] }
  0x13   : > { %393 = vmatpush3.bf16.msra.mxu0 %v411_v4 }
  0x16   : > { %395 = vmatmul.mubr.msk.bf16.vlgmr.msra.gmra.mrb[0].mxu0 %vm252_vm1, %v212_v6 }
  0xe9   : > { %v290_v8 = vpop.f32.mrb[0].mxu0 }
  0xea   : > { %v291_v10 = vadd.f32 %v373_v7, %v290_v8  ;;  %v396_v11 = vpop.f32.mrb[1].mxu0 }
  0xeb   : > { %v293_v12 = vpop.f32.mrb[2].mxu0 }
  0xec   : > { %v297_v13 = vadd.f32 %v296_v9, %v291_v10  ;;  %v397_v14 = vpop.f32.mrb[3].mxu0 }
  0xee   : > { %299 = vst.msk [vmem:[%s209_s10] sm:$0xff] %vm298_vm2, %v297_v13 }
  0xef PF: > { %s14_s15 = sadd.s32 1, %s418_s15  }
  0xf0   : > { %p11_p4 = scmp.ge.s32.totalorder %s14_s15, 4  }
  0xf2   :  { %13 = sbr.rel (!%p11_p4) target bundleno = 1 (0x1), region = 69 }

</bundles_post_ra>
